<compile_context>
chip_gen: v6e
topology: v6e:2x2x1
jax: 0.10.0
libtpu: 0.0.40
codegen_flags: <defaults>
</compile_context>

<pallas_src>
import functools
import math

import jax
import jax.numpy as jnp
from jax.experimental import pallas as pl
from jax.experimental.pallas import tpu as pltpu


def _round_up(x, m):
    return (x + m - 1) // m * m


# ----------------------------- Pallas kernel -----------------------------
# Per grid step (one image):
#   xb  = relu(x) halo-padded, flattened to [C, L_in]      (f32, from wrapper)
#   h   = sum_{di,dj} W1[di,dj] @ xb[:, off:off+L_out]     (9 bf16 MXU GEMMs)
#   h   = relu(h)
#   y   = W2 @ h                                           (f32 MXU GEMM, tiny)
#   out = xb[:, centre_tap] + y                            (residual = relu(x))
def _residual_block_kernel(x_ref, w1_ref, w2_ref, o_ref, *, width, l_out):
    xb = x_ref[...]                                   # [C, L_in] f32
    w1 = w1_ref[...]                                  # [9, Cr, C] bf16
    cr = w1.shape[1]

    h = jnp.zeros((cr, l_out), jnp.float32)
    # 3x3 conv (pad=1) as 9 lane-shifted GEMMs: in-kernel im2col, no K padding.
    for di in range(3):
        for dj in range(3):
            off = di * (width + 2) + dj               # static lane offset
            tap = xb[:, off:off + l_out].astype(jnp.bfloat16)
            h = h + jnp.dot(w1[di * 3 + dj], tap,
                            preferred_element_type=jnp.float32)
    h = jnp.maximum(h, 0.0)

    # 1x1 conv kept fully in f32 (tiny K; addresses bf16-precision concern).
    y = jnp.dot(w2_ref[...], h, preferred_element_type=jnp.float32)

    res = xb[:, (width + 3):(width + 3) + l_out]      # centre tap == relu(x), f32
    o_ref[...] = res + y


# ----------------------------- one-time weight prep -----------------------------

def prepare_params(w1_oihw, w2_oihw):
    """Reorder weights once at init; no channel padding needed."""
    cr, cin, kh, kw = w1_oihw.shape
    cout, cr2, k1, k2 = w2_oihw.shape
    assert (kh, kw) == (3, 3) and (k1, k2) == (1, 1) and cr2 == cr
    assert cin == cout, "residual add requires in_channels == num_hiddens"
    # 3x3: (Cr, Cin, 3, 3) -> (3, 3, Cr, Cin) -> (9, Cr, Cin), bf16 for the MXU.
    w1m = jnp.transpose(w1_oihw, (2, 3, 0, 1)).reshape(9, cr, cin).astype(jnp.bfloat16)
    # 1x1: (Cout, Cr, 1, 1) -> (Cout, Cr), kept f32.
    w2m = w2_oihw[:, :, 0, 0].astype(jnp.float32)
    return w1m, w2m


# ----------------------------- jit'd forward -----------------------------

@jax.jit
def residual_forward(x_nchw, w1m, w2m):
    B, C, H, W = x_nchw.shape
    n_taps, cr, cin = w1m.shape
    assert n_taps == 9 and cin == C and w2m.shape == (C, cr)

    l_out = H * (W + 2)                   # flat output length per image
    s_in = (H + 2) * (W + 2)              # flat halo-padded input length
    l_in = _round_up(s_in + 2, 128)       # + tap overshoot, lane-rounded

    # relu(x) ONCE (inplace-ReLU semantics -> residual term is relu(x)),
    # zero halo pad, flatten (row, col) so the 9 conv taps become constant
    # lane offsets inside the kernel.  relu(0) == 0, so padding after relu
    # matches PyTorch's conv padding of the post-relu tensor.
    y = jnp.maximum(x_nchw.astype(jnp.float32), 0.0)
    xp = jnp.pad(y, ((0, 0), (0, 0), (1, 1), (1, 1))).reshape(B, C, s_in)
    xflat = jnp.pad(xp, ((0, 0), (0, 0), (0, l_in - s_in)))

    flops = 2 * B * l_out * (9 * C * cr + cr * C)
    bytes_accessed = (B * C * l_in * 4 + B * C * l_out * 4
                      + w1m.size * 2 + w2m.size * 4)

    out = pl.pallas_call(
        functools.partial(_residual_block_kernel, width=W, l_out=l_out),
        grid=(B,),
        in_specs=[
            pl.BlockSpec((None, C, l_in), lambda b: (b, 0, 0)),   # image slab
            pl.BlockSpec((9, cr, C), lambda b: (0, 0, 0)),        # W1 (resident)
            pl.BlockSpec((C, cr), lambda b: (0, 0)),              # W2 (resident)
        ],
        out_specs=pl.BlockSpec((None, C, l_out), lambda b: (b, 0, 0)),
        out_shape=jax.ShapeDtypeStruct((B, C, l_out), jnp.float32),
        compiler_params=pltpu.CompilerParams(
            dimension_semantics=("parallel",),
            vmem_limit_bytes=32 * 1024 * 1024),
        cost_estimate=pl.CostEstimate(
            flops=flops, transcendentals=0, bytes_accessed=bytes_accessed),
    )(xflat, w1m, w2m)

    # [B, C, H*(W+2)] -> [B, C, H, W+2] -> drop the 2 halo columns per row.
    return out.reshape(B, C, H, W + 2)[:, :, :, :W]


# ----------------------------- reference -----------------------------

def ref_forward(x, w1, w2):
    y = jax.nn.relu(x)                     # inplace ReLU(True) mutates x
    h = jax.lax.conv_general_dilated(
        y, w1, window_strides=(1, 1), padding=[(1, 1), (1, 1)],
        dimension_numbers=("NCHW", "OIHW", "NCHW"),
        precision=jax.lax.Precision.HIGHEST)
    h = jax.nn.relu(h)
    z = jax.lax.conv_general_dilated(
        h, w2, window_strides=(1, 1), padding=[(0, 0), (0, 0)],
        dimension_numbers=("NCHW", "OIHW", "NCHW"),
        precision=jax.lax.Precision.HIGHEST)
    return y + z


# ----------------------------- main -----------------------------

if __name__ == "__main__":
    in_channels = 32            # must equal num_hiddens for the residual add
    num_hiddens = 32
    num_residual_hiddens = 16
    B, H, W = 2, 16, 16

    key = jax.random.PRNGKey(0)
    k1, k2, kx = jax.random.split(key, 3)
    b1 = 1.0 / math.sqrt(in_channels * 9)
    w1 = jax.random.uniform(k1, (num_residual_hiddens, in_channels, 3, 3),
                            jnp.float32, -b1, b1)
    b2 = 1.0 / math.sqrt(num_residual_hiddens)
    w2 = jax.random.uniform(k2, (num_hiddens, num_residual_hiddens, 1, 1),
                            jnp.float32, -b2, b2)
    x = jax.random.normal(kx, (B, in_channels, H, W), jnp.float32)

    w1m, w2m = prepare_params(w1, w2)      # once, outside the jit'd forward

    out = jax.block_until_ready(residual_forward(x, w1m, w2m))

    ref = jax.block_until_ready(ref_forward(x, w1, w2))
    assert out.shape == ref.shape, (out.shape, ref.shape)
    rel_err = float(jnp.max(jnp.abs(out - ref)) / (jnp.max(jnp.abs(ref)) + 1e-6))
    assert rel_err < 2e-2, f"mismatch vs reference: rel_err={rel_err}"

    print("KERNEL_OK")
</pallas_src>

<mosaic_0001>
module attributes {stable_mosaic.version = 11 : i64} {
  func.func @_residual_block_kernel(%arg0: i32, %arg1: memref<1x32x384xf32, #tpu.memory_space<vmem>>, %arg2: memref<9x16x32xbf16, #tpu.memory_space<vmem>>, %arg3: memref<32x16xf32, #tpu.memory_space<vmem>>, %arg4: memref<1x32x288xf32, #tpu.memory_space<vmem>>) attributes {dimension_semantics = [#tpu.dimension_semantics<parallel>], iteration_bounds = array<i64: 2>, scalar_prefetch = 0 : i64, scratch_operands = 0 : i64, tpu.core_type = #tpu.core_type<tc>, window_params = [{transform_indices = @transform_0, window_bounds = array<i64: 1, 32, 384>}, {pipeline_mode = #tpu.pipeline_mode<synchronous>, transform_indices = @transform_1, window_bounds = array<i64: 9, 16, 32>}, {pipeline_mode = #tpu.pipeline_mode<synchronous>, transform_indices = @transform_2, window_bounds = array<i64: 32, 16>}, {transform_indices = @transform_3, window_bounds = array<i64: 1, 32, 288>}]} {
    %c0 = arith.constant 0 : index
    %c0_0 = arith.constant 0 : index
    %c0_1 = arith.constant 0 : index
    %0 = vector.load %arg1[%c0, %c0_0, %c0_1] : memref<1x32x384xf32, #tpu.memory_space<vmem>>, vector<1x32x384xf32>
    %1 = vector.shape_cast %0 : vector<1x32x384xf32> to vector<32x384xf32>
    %c0_2 = arith.constant 0 : index
    %c0_3 = arith.constant 0 : index
    %c0_4 = arith.constant 0 : index
    %2 = vector.load %arg2[%c0_2, %c0_3, %c0_4] : memref<9x16x32xbf16, #tpu.memory_space<vmem>>, vector<9x16x32xbf16>
    %cst = arith.constant 0.000000e+00 : f32
    %3 = vector.broadcast %cst : f32 to vector<16x288xf32>
    %4 = vector.extract_strided_slice %1 {offsets = [0, 0], sizes = [32, 288], strides = [1, 1]} : vector<32x384xf32> to vector<32x288xf32>
    %5 = arith.truncf %4 : vector<32x288xf32> to vector<32x288xbf16>
    %6 = vector.extract_strided_slice %2 {offsets = [0, 0, 0], sizes = [1, 16, 32], strides = [1, 1, 1]} : vector<9x16x32xbf16> to vector<1x16x32xbf16>
    %7 = vector.shape_cast %6 : vector<1x16x32xbf16> to vector<16x32xbf16>
    %cst_5 = arith.constant dense<0.000000e+00> : vector<16x288xf32>
    %8 = tpu.matmul %7, %5, %cst_5 {dimension_numbers = #tpu.dot_dimension_numbers<[1], [0], [0], [1], [0, 0, 1, 1], [], []>} : vector<16x32xbf16>, vector<32x288xbf16>, vector<16x288xf32> -> vector<16x288xf32>
    %9 = arith.addf %3, %8 : vector<16x288xf32>
    %10 = vector.extract_strided_slice %1 {offsets = [0, 1], sizes = [32, 288], strides = [1, 1]} : vector<32x384xf32> to vector<32x288xf32>
    %11 = arith.truncf %10 : vector<32x288xf32> to vector<32x288xbf16>
    %12 = vector.extract_strided_slice %2 {offsets = [1, 0, 0], sizes = [1, 16, 32], strides = [1, 1, 1]} : vector<9x16x32xbf16> to vector<1x16x32xbf16>
    %13 = vector.shape_cast %12 : vector<1x16x32xbf16> to vector<16x32xbf16>
    %cst_6 = arith.constant dense<0.000000e+00> : vector<16x288xf32>
    %14 = tpu.matmul %13, %11, %cst_6 {dimension_numbers = #tpu.dot_dimension_numbers<[1], [0], [0], [1], [0, 0, 1, 1], [], []>} : vector<16x32xbf16>, vector<32x288xbf16>, vector<16x288xf32> -> vector<16x288xf32>
    %15 = arith.addf %9, %14 : vector<16x288xf32>
    %16 = vector.extract_strided_slice %1 {offsets = [0, 2], sizes = [32, 288], strides = [1, 1]} : vector<32x384xf32> to vector<32x288xf32>
    %17 = arith.truncf %16 : vector<32x288xf32> to vector<32x288xbf16>
    %18 = vector.extract_strided_slice %2 {offsets = [2, 0, 0], sizes = [1, 16, 32], strides = [1, 1, 1]} : vector<9x16x32xbf16> to vector<1x16x32xbf16>
    %19 = vector.shape_cast %18 : vector<1x16x32xbf16> to vector<16x32xbf16>
    %cst_7 = arith.constant dense<0.000000e+00> : vector<16x288xf32>
    %20 = tpu.matmul %19, %17, %cst_7 {dimension_numbers = #tpu.dot_dimension_numbers<[1], [0], [0], [1], [0, 0, 1, 1], [], []>} : vector<16x32xbf16>, vector<32x288xbf16>, vector<16x288xf32> -> vector<16x288xf32>
    %21 = arith.addf %15, %20 : vector<16x288xf32>
    %22 = vector.extract_strided_slice %1 {offsets = [0, 18], sizes = [32, 288], strides = [1, 1]} : vector<32x384xf32> to vector<32x288xf32>
    %23 = arith.truncf %22 : vector<32x288xf32> to vector<32x288xbf16>
    %24 = vector.extract_strided_slice %2 {offsets = [3, 0, 0], sizes = [1, 16, 32], strides = [1, 1, 1]} : vector<9x16x32xbf16> to vector<1x16x32xbf16>
    %25 = vector.shape_cast %24 : vector<1x16x32xbf16> to vector<16x32xbf16>
    %cst_8 = arith.constant dense<0.000000e+00> : vector<16x288xf32>
    %26 = tpu.matmul %25, %23, %cst_8 {dimension_numbers = #tpu.dot_dimension_numbers<[1], [0], [0], [1], [0, 0, 1, 1], [], []>} : vector<16x32xbf16>, vector<32x288xbf16>, vector<16x288xf32> -> vector<16x288xf32>
    %27 = arith.addf %21, %26 : vector<16x288xf32>
    %28 = vector.extract_strided_slice %1 {offsets = [0, 19], sizes = [32, 288], strides = [1, 1]} : vector<32x384xf32> to vector<32x288xf32>
    %29 = arith.truncf %28 : vector<32x288xf32> to vector<32x288xbf16>
    %30 = vector.extract_strided_slice %2 {offsets = [4, 0, 0], sizes = [1, 16, 32], strides = [1, 1, 1]} : vector<9x16x32xbf16> to vector<1x16x32xbf16>
    %31 = vector.shape_cast %30 : vector<1x16x32xbf16> to vector<16x32xbf16>
    %cst_9 = arith.constant dense<0.000000e+00> : vector<16x288xf32>
    %32 = tpu.matmul %31, %29, %cst_9 {dimension_numbers = #tpu.dot_dimension_numbers<[1], [0], [0], [1], [0, 0, 1, 1], [], []>} : vector<16x32xbf16>, vector<32x288xbf16>, vector<16x288xf32> -> vector<16x288xf32>
    %33 = arith.addf %27, %32 : vector<16x288xf32>
    %34 = vector.extract_strided_slice %1 {offsets = [0, 20], sizes = [32, 288], strides = [1, 1]} : vector<32x384xf32> to vector<32x288xf32>
    %35 = arith.truncf %34 : vector<32x288xf32> to vector<32x288xbf16>
    %36 = vector.extract_strided_slice %2 {offsets = [5, 0, 0], sizes = [1, 16, 32], strides = [1, 1, 1]} : vector<9x16x32xbf16> to vector<1x16x32xbf16>
    %37 = vector.shape_cast %36 : vector<1x16x32xbf16> to vector<16x32xbf16>
    %cst_10 = arith.constant dense<0.000000e+00> : vector<16x288xf32>
    %38 = tpu.matmul %37, %35, %cst_10 {dimension_numbers = #tpu.dot_dimension_numbers<[1], [0], [0], [1], [0, 0, 1, 1], [], []>} : vector<16x32xbf16>, vector<32x288xbf16>, vector<16x288xf32> -> vector<16x288xf32>
    %39 = arith.addf %33, %38 : vector<16x288xf32>
    %40 = vector.extract_strided_slice %1 {offsets = [0, 36], sizes = [32, 288], strides = [1, 1]} : vector<32x384xf32> to vector<32x288xf32>
    %41 = arith.truncf %40 : vector<32x288xf32> to vector<32x288xbf16>
    %42 = vector.extract_strided_slice %2 {offsets = [6, 0, 0], sizes = [1, 16, 32], strides = [1, 1, 1]} : vector<9x16x32xbf16> to vector<1x16x32xbf16>
    %43 = vector.shape_cast %42 : vector<1x16x32xbf16> to vector<16x32xbf16>
    %cst_11 = arith.constant dense<0.000000e+00> : vector<16x288xf32>
    %44 = tpu.matmul %43, %41, %cst_11 {dimension_numbers = #tpu.dot_dimension_numbers<[1], [0], [0], [1], [0, 0, 1, 1], [], []>} : vector<16x32xbf16>, vector<32x288xbf16>, vector<16x288xf32> -> vector<16x288xf32>
    %45 = arith.addf %39, %44 : vector<16x288xf32>
    %46 = vector.extract_strided_slice %1 {offsets = [0, 37], sizes = [32, 288], strides = [1, 1]} : vector<32x384xf32> to vector<32x288xf32>
    %47 = arith.truncf %46 : vector<32x288xf32> to vector<32x288xbf16>
    %48 = vector.extract_strided_slice %2 {offsets = [7, 0, 0], sizes = [1, 16, 32], strides = [1, 1, 1]} : vector<9x16x32xbf16> to vector<1x16x32xbf16>
    %49 = vector.shape_cast %48 : vector<1x16x32xbf16> to vector<16x32xbf16>
    %cst_12 = arith.constant dense<0.000000e+00> : vector<16x288xf32>
    %50 = tpu.matmul %49, %47, %cst_12 {dimension_numbers = #tpu.dot_dimension_numbers<[1], [0], [0], [1], [0, 0, 1, 1], [], []>} : vector<16x32xbf16>, vector<32x288xbf16>, vector<16x288xf32> -> vector<16x288xf32>
    %51 = arith.addf %45, %50 : vector<16x288xf32>
    %52 = vector.extract_strided_slice %1 {offsets = [0, 38], sizes = [32, 288], strides = [1, 1]} : vector<32x384xf32> to vector<32x288xf32>
    %53 = arith.truncf %52 : vector<32x288xf32> to vector<32x288xbf16>
    %54 = vector.extract_strided_slice %2 {offsets = [8, 0, 0], sizes = [1, 16, 32], strides = [1, 1, 1]} : vector<9x16x32xbf16> to vector<1x16x32xbf16>
    %55 = vector.shape_cast %54 : vector<1x16x32xbf16> to vector<16x32xbf16>
    %cst_13 = arith.constant dense<0.000000e+00> : vector<16x288xf32>
    %56 = tpu.matmul %55, %53, %cst_13 {dimension_numbers = #tpu.dot_dimension_numbers<[1], [0], [0], [1], [0, 0, 1, 1], [], []>} : vector<16x32xbf16>, vector<32x288xbf16>, vector<16x288xf32> -> vector<16x288xf32>
    %57 = arith.addf %51, %56 : vector<16x288xf32>
    %cst_14 = arith.constant 0.000000e+00 : f32
    %58 = vector.broadcast %cst_14 : f32 to vector<16x288xf32>
    %59 = arith.maximumf %57, %58 : vector<16x288xf32>
    %c0_15 = arith.constant 0 : index
    %c0_16 = arith.constant 0 : index
    %60 = vector.load %arg3[%c0_15, %c0_16] : memref<32x16xf32, #tpu.memory_space<vmem>>, vector<32x16xf32>
    %cst_17 = arith.constant dense<0.000000e+00> : vector<32x288xf32>
    %61 = tpu.matmul %60, %59, %cst_17 {dimension_numbers = #tpu.dot_dimension_numbers<[1], [0], [0], [1], [0, 0, 1, 1], [], []>} : vector<32x16xf32>, vector<16x288xf32>, vector<32x288xf32> -> vector<32x288xf32>
    %62 = vector.extract_strided_slice %1 {offsets = [0, 19], sizes = [32, 288], strides = [1, 1]} : vector<32x384xf32> to vector<32x288xf32>
    %63 = arith.addf %62, %61 : vector<32x288xf32>
    %c0_18 = arith.constant 0 : index
    %c0_19 = arith.constant 0 : index
    %c0_20 = arith.constant 0 : index
    %64 = vector.load %arg4[%c0_18, %c0_19, %c0_20] : memref<1x32x288xf32, #tpu.memory_space<vmem>>, vector<1x32x288xf32>
    %65 = vector.shape_cast %64 : vector<1x32x288xf32> to vector<32x288xf32>
    %66 = vector.shape_cast %63 : vector<32x288xf32> to vector<1x32x288xf32>
    tpu.vector_store %arg4[%c0_18, %c0_19, %c0_20], %66 {strides = array<i32>} : memref<1x32x288xf32, #tpu.memory_space<vmem>>, vector<1x32x288xf32>,
    return
  }
  func.func @transform_0(%arg0: i32) -> (i32, i32, i32) {
    %c0_i32 = arith.constant 0 : i32
    %c0_i32_0 = arith.constant 0 : i32
    %c0_i32_1 = arith.constant 0 : i32
    return %arg0, %c0_i32, %c0_i32_0 : i32, i32, i32
  }
  func.func @transform_1(%arg0: i32) -> (i32, i32, i32) {
    %c0_i32 = arith.constant 0 : i32
    %c0_i32_0 = arith.constant 0 : i32
    %c0_i32_1 = arith.constant 0 : i32
    %c0_i32_2 = arith.constant 0 : i32
    return %c0_i32, %c0_i32_0, %c0_i32_1 : i32, i32, i32
  }
  func.func @transform_2(%arg0: i32) -> (i32, i32) {
    %c0_i32 = arith.constant 0 : i32
    %c0_i32_0 = arith.constant 0 : i32
    %c0_i32_1 = arith.constant 0 : i32
    return %c0_i32, %c0_i32_0 : i32, i32
  }
  func.func @transform_3(%arg0: i32) -> (i32, i32, i32) {
    %c0_i32 = arith.constant 0 : i32
    %c0_i32_0 = arith.constant 0 : i32
    %c0_i32_1 = arith.constant 0 : i32
    return %arg0, %c0_i32, %c0_i32_0 : i32, i32, i32
  }
}

</mosaic_0001>

<bundles_post_ra>
// kernel: residual_forward.1
= control target key start
LH: loop header
LB: loop body
LE: loop exit
PB: predicated region body
PF: predicated region fallthrough
CT: control target
= control target key end

     0   :  { %s1892_s12 = smov 0   ;;  %s2223_s0 = inlined_call_operand.vmem [shape: f32[2,32,384], index: 0, kind: input, shape index: {}]   ;;  %s2224_s1 = inlined_call_operand.vmem [shape: bf16[9,16,32], index: 1, kind: input, shape index: {}]   ;;  %s2225_s2 = inlined_call_operand.vmem [shape: f32[32,16], index: 2, kind: input, shape index: {}]   ;;  %s2226_s3 = inlined_call_operand.vmem [shape: f32[2,32,288], index: 3, kind: output, shape index: {}]  }
   0x1 LB: > { %s1659_s13 = sadd.s32 4294967295, %s1858_s12   ;;  %p1663_p0 = scmp.ge.s32.totalorder %s1858_s12, 1  ;;  %s1858_s12 = sphi %s1892_s12, %s13_s12  }
   0x2   : > { %p137_p1 = scmp.lt.s32.totalorder %s1858_s12, 3 }
   0x4   : > { %p138_p2 = pnand %p1663_p0, %p137_p1 }
   0x6   : > { %141 = sbr.rel (%p138_p2) target bundleno = 889 (0x379), region = 32 }
   0xb   : > { %p161_p3 = scmp.lt.s32.totalorder %s1659_s13, 1  ;;  %v2227_v0 = vmov 0.0   ;;  %vm1861_vm0 = vmmov 0   ;;  %s1862_s18 = smov 127   ;;  %v1863_v14 = vmov 0   ;;  %vm231_vm1 = vcmask 1039360  }
   0xc   : > { %1736 = vmatprep.subr.bf16.mxu1 %v2227_v0  ;;  %1740 = vmatprep.mubr.msk.bf16.mxu1 %vm1861_vm0, %v2227_v0  ;;  %s1864_s19 = smov 126   ;;  %s1865_s20 = smov 110   ;;  %v1843_v27 = vld [vmem:[%s2224_s1 + $0x8] sm:$0xff]   ;;  %vm242_vm2 = vcmask 261120   ;;  %vm439_vm3 = vcmask 1031168   ;;  %v1844_v34 = vld [vmem:[%s2224_s1] sm:$0xff]  }
   0xd   : > { %s2252_s13 = smov (!%p161_p3, %s1659_s13), 1  ;;  %278 = vmatprep.mubr.bf16.mxu0 %v1863_v14  ;;  %s1866_s21 = smov 109   ;;  %vm560_vm4 = vcmask 900096   ;;  %v1845_v42 = vld [vmem:[%s2224_s1 + $0x10] sm:$0xff]   ;;  %v1846_v50 = vld [vmem:[%s2224_s1 + $0x18] sm:$0xff]   ;;  %vm681_vm5 = vcmask 891904  }
   0xe   : > { %s1822_s14 = smul.u32 96, %s2252_s13  ;;  %s1867_s22 = smov 108   ;;  %v1847_v61 = vld [vmem:[%s2224_s1 + $0x20] sm:$0xff]   ;;  %vm802_vm6 = vcmask 883712   ;;  %vm923_vm7 = vcmask 752640   ;;  %vm1044_vm8 = vcmask 744448  }
   0xf   : > { %s1868_s23 = smov 92   ;;  %s1869_s24 = smov 91   ;;  %vm1165_vm9 = vcmask 736256   ;;  %vm1279_vm10 = vcmask 130048   ;;  %vm1502_vm11 = vcmask 154624  }
  0x10   : > { %s165_s17 = scalar_lea.vmem %s2223_s0, %s1822_s14  ;;  %s1870_s25 = smov 90  }
  0x11   : > { %v1909_v1 = vld [vmem:[%s165_s17 + $0x38] sm:$0xff]  ;;  %v1911_v2 = vld [vmem:[%s165_s17 + $0x50] sm:$0xff]  ;;  %v1919_v5 = vld [vmem:[%s165_s17 + $0x48] sm:$0xff]  ;;  %s1871_s29 = smov 19   ;;  %s170_s5 = scalar_lea.vmem %s2226_s3, %s1822_s14 }
  0x12   : > { %2236 = vst [vmem:[#allocation2_spill] sm:$0xff] %v1909_v1  ;;  %2237 = vst [vmem:[#allocation3_spill] sm:$0xff] %v1911_v2  ;;  %v1913_v3 = vld [vmem:[%s165_s17 + $0x30] sm:$0xff]  ;;  %v1917_v4 = vpack.c.bf16 %v1911_v2, %v1909_v1  ;;  %v1921_v6 = vld [vmem:[%s165_s17 + $0x40] sm:$0xff] }
  0x13   : > { %2238 = vst [vmem:[#allocation4_spill] sm:$0xff] %v1913_v3  ;;  %2239 = vst [vmem:[#allocation5_spill] sm:$0xff] %v1921_v6  ;;  %v1923_v7 = vld [vmem:[%s165_s17 + $0x58] sm:$0xff]  ;;  %v1929_v8 = vpack.c.bf16 %v1919_v5, %v1913_v3  ;;  %v1931_v9 = vld [vmem:[%s165_s17 + $0x8] sm:$0xff] }
  0x14   : > { %2240 = vst [vmem:[#allocation6_spill] sm:$0xff] %v1923_v7  ;;  %v1933_v10 = vld [vmem:[%s165_s17 + $0x20] sm:$0xff]  ;;  %227 = vrot.lane.b32.xlu0 %v1917_v4, %s1862_s18  ;;  %v1938_v11 = vpack.c.bf16 %v1923_v7, %v1921_v6  ;;  %v1940_v12 = vld [vmem:[%s165_s17 + $0x10] sm:$0xff]  ;;  %v1942_v13 = vld [vmem:[%s165_s17 + $0x28] sm:$0xff] }
  0x15   : > { %2241 = vst [vmem:[#allocation7_spill] sm:$0xff] %v1933_v10  ;;  %2242 = vst [vmem:[#allocation8_spill] sm:$0xff] %v1942_v13  ;;  %225 = vrot.lane.b32.xlu1 %v1929_v8, %s1862_s18  ;;  %v1948_v15 = vpack.c.bf16 %v1933_v10, %v1931_v9  ;;  %v1950_v16 = vld [vmem:[%s165_s17] sm:$0xff]  ;;  %v1952_v17 = vld [vmem:[%s165_s17 + $0x18] sm:$0xff]  ;;  %v1957_v18 = vpack.c.bf16 %v1942_v13, %v1940_v12 }
  0x16   : > { %v1962_v19 = vpack.c.bf16 %v1952_v17, %v1950_v16 }
  0x18   : > { %229 = vrot.lane.b32.xlu0 %v1938_v11, %s1862_s18 }
  0x19   : > { %221 = vrot.lane.b32.xlu1 %v1948_v15, %s1862_s18 }
  0x1c   : > { %223 = vrot.lane.b32.xlu0 %v1957_v18, %s1862_s18 }
  0x1d   : > { %219 = vrot.lane.b32.xlu1 %v1962_v19, %s1862_s18 }
  0x20   : > { %435 = vrot.lane.b32.xlu0 %v1917_v4, %s1864_s19 }
  0x21   : > { %437 = vrot.lane.b32.xlu1 %v1938_v11, %s1864_s19 }
  0x24   : > { %433 = vrot.lane.b32.xlu0 %v1929_v8, %s1864_s19 }
  0x25   : > { %429 = vrot.lane.b32.xlu1 %v1948_v15, %s1864_s19 }
  0x28   : > { %431 = vrot.lane.b32.xlu0 %v1957_v18, %s1864_s19 }
  0x29   : > { %427 = vrot.lane.b32.xlu1 %v1962_v19, %s1864_s19 }
  0x2c   : > { %556 = vrot.lane.b32.xlu0 %v1917_v4, %s1865_s20 }
  0x2d   : > { %558 = vrot.lane.b32.xlu1 %v1938_v11, %s1865_s20 }
  0x30   : > { %554 = vrot.lane.b32.xlu0 %v1929_v8, %s1865_s20 }
  0x31   : > { %550 = vrot.lane.b32.xlu1 %v1948_v15, %s1865_s20 }
  0x34   : > { %552 = vrot.lane.b32.xlu0 %v1957_v18, %s1865_s20 }
  0x35   : > { %548 = vrot.lane.b32.xlu1 %v1962_v19, %s1865_s20 }
  0x38   : > { %677 = vrot.lane.b32.xlu0 %v1917_v4, %s1866_s21 }
  0x39   : > { %679 = vrot.lane.b32.xlu1 %v1938_v11, %s1866_s21 }
  0x3c   : > { %675 = vrot.lane.b32.xlu0 %v1929_v8, %s1866_s21 }
  0x3d   : > { %671 = vrot.lane.b32.xlu1 %v1948_v15, %s1866_s21 }
  0x40   : > { %673 = vrot.lane.b32.xlu0 %v1957_v18, %s1866_s21 }
  0x41   : > { %669 = vrot.lane.b32.xlu1 %v1962_v19, %s1866_s21 }
  0x44   : > { %798 = vrot.lane.b32.xlu0 %v1917_v4, %s1867_s22 }
  0x45   : > { %800 = vrot.lane.b32.xlu1 %v1938_v11, %s1867_s22 }
  0x48   : > { %796 = vrot.lane.b32.xlu0 %v1929_v8, %s1867_s22 }
  0x49   : > { %792 = vrot.lane.b32.xlu1 %v1948_v15, %s1867_s22 }
  0x4c   : > { %794 = vrot.lane.b32.xlu0 %v1957_v18, %s1867_s22 }
  0x4d   : > { %790 = vrot.lane.b32.xlu1 %v1962_v19, %s1867_s22 }
  0x50   : > { %919 = vrot.lane.b32.xlu0 %v1917_v4, %s1868_s23 }
  0x51   : > { %921 = vrot.lane.b32.xlu1 %v1938_v11, %s1868_s23 }
  0x54   : > { %917 = vrot.lane.b32.xlu0 %v1929_v8, %s1868_s23 }
  0x55   : > { %913 = vrot.lane.b32.xlu1 %v1948_v15, %s1868_s23 }
  0x58   : > { %915 = vrot.lane.b32.xlu0 %v1957_v18, %s1868_s23 }
  0x59   : > { %911 = vrot.lane.b32.xlu1 %v1962_v19, %s1868_s23 }
  0x5c   : > { %1040 = vrot.lane.b32.xlu0 %v1917_v4, %s1869_s24 }
  0x5d   : > { %1042 = vrot.lane.b32.xlu1 %v1938_v11, %s1869_s24 }
  0x60   : > { %1038 = vrot.lane.b32.xlu0 %v1929_v8, %s1869_s24 }
  0x61   : > { %1034 = vrot.lane.b32.xlu1 %v1948_v15, %s1869_s24 }
  0x64   : > { %1036 = vrot.lane.b32.xlu0 %v1957_v18, %s1869_s24 }
  0x65   : > { %1032 = vrot.lane.b32.xlu1 %v1962_v19, %s1869_s24 }
  0x68   : > { %1161 = vrot.lane.b32.xlu0 %v1917_v4, %s1870_s25 }
  0x69   : > { %1163 = vrot.lane.b32.xlu1 %v1938_v11, %s1870_s25 }
  0x6c   : > { %1159 = vrot.lane.b32.xlu0 %v1929_v8, %s1870_s25 }
  0x6d   : > { %1155 = vrot.lane.b32.xlu1 %v1948_v15, %s1870_s25 }
  0x70   : > { %1157 = vrot.lane.b32.xlu0 %v1957_v18, %s1870_s25 }
  0x71   : > { %1153 = vrot.lane.b32.xlu1 %v1962_v19, %s1870_s25 }
  0x86   : > { %v228_v20 = vpop.permute.xlu0 %227 }
  0x87   : > { %v226_v21 = vpop.permute.xlu1 %225 }
  0x88   : > { %v234_v25 = vsel %vm231_vm1, %v226_v21, %v228_v20 }
  0x8a   : > { %v230_v22 = vpop.permute.xlu0 %229 }
  0x8b   : > { %v222_v23 = vpop.permute.xlu1 %221  ;;  %1737 = vmatpush3.bf16.msra.mxu1 %v230_v22  ;;  %v235_v24 = vsel %vm231_vm1, %v228_v20, %v230_v22  ;;  %v1848_v22 = vld [vmem:[%s2224_s1 + $0x28] sm:$0xff]  }
  0x8c   : > { %258 = vmatprep.subr.bf16.mxu0 %v235_v24  ;;  %1738 = vmatprep.subr.bf16.mxu1 %v2227_v0 }
  0x8d   : > { %259 = vmatpush1.bf16.msra.mxu0 %v234_v25 }
  0x8e   : > { %v224_v26 = vpop.permute.xlu0 %223 }
  0x8f   : > { %v220_v28 = vpop.permute.xlu1 %219  ;;  %1739 = vmatpush3.bf16.msra.mxu1 %v224_v26  ;;  %v233_v29 = vsel %vm231_vm1, %v222_v23, %v224_v26 }
  0x90   : > { %260 = vmatprep.subr.bf16.mxu0 %v233_v29  ;;  %v232_v30 = vsel %vm231_vm1, %v220_v28, %v222_v23  ;;  %1744 = vmatprep.subr.bf16.mxu1 %v2227_v0 }
  0x91   : > { %261 = vmatpush1.bf16.msra.mxu0 %v232_v30 }
  0x92   : > { %v436_v31 = vpop.permute.xlu0 %435  ;;  %1741 = vmatmul.mubr.msk.bf16.vlgmr.msra.gmra.mxu1 %vm242_vm2, %v1843_v27  ;;  %350 = vmatprep.subr.bf16.mxu0 %v1917_v4 }
  0x93   : > { %v438_v32 = vpop.permute.xlu1 %437  ;;  %1745 = vmatpush3.bf16.msra.mxu1 %v1938_v11  ;;  %1748 = vmatprep.mubr.msk.bf16.mxu1 %vm1861_vm0, %v2227_v0 }
  0x94   : > { %1667 = vmatmul.mubr.msk.bf16.vlgmr.msra.gmra.mxu0 %vm242_vm2, %v1843_v27  ;;  %1746 = vmatprep.subr.bf16.mxu1 %v2227_v0  ;;  %v443_v36 = vsel %vm439_vm3, %v436_v31, %v438_v32 }
  0x95   : > { %351 = vmatpush1.bf16.msra.mxu0 %v1929_v8  ;;  %370 = vmatprep.mubr.bf16.mxu0 %v1863_v14 }
  0x96   : > { %v434_v33 = vpop.permute.xlu0 %433  ;;  %352 = vmatprep.subr.bf16.mxu0 %v1948_v15 }
  0x97   : > { %v430_v35 = vpop.permute.xlu1 %429  ;;  %1747 = vmatpush3.bf16.msra.mxu1 %v1957_v18  ;;  %v442_v39 = vsel %vm439_vm3, %v434_v33, %v436_v31  ;;  %v1849_v33 = vld [vmem:[%s2224_s1 + $0x30] sm:$0xff]  }
  0x98   : > { %1752 = vmatprep.subr.bf16.mxu1 %v2227_v0 }
  0x99   : > { %353 = vmatpush1.bf16.msra.mxu0 %v1962_v19 }
  0x9a   : > { %v432_v37 = vpop.permute.xlu0 %431  ;;  %465 = vmatprep.subr.bf16.mxu0 %v443_v36  ;;  %1749 = vmatmul.mubr.msk.bf16.vlgmr.msra.gmra.mxu1 %vm242_vm2, %v1844_v34 }
  0x9b   : > { %v428_v38 = vpop.permute.xlu1 %427  ;;  %1753 = vmatpush3.bf16.msra.mxu1 %v438_v32  ;;  %1756 = vmatprep.mubr.msk.bf16.mxu1 %vm1861_vm0, %v2227_v0  ;;  %v441_v40 = vsel %vm439_vm3, %v430_v35, %v432_v37 }
  0x9c   : > { %1670 = vmatmul.mubr.msk.bf16.vlgmr.msra.gmra.mxu0 %vm242_vm2, %v1844_v34  ;;  %1754 = vmatprep.subr.bf16.mxu1 %v2227_v0  ;;  %v440_v44 = vsel %vm439_vm3, %v428_v38, %v430_v35 }
  0x9d   : > { %466 = vmatpush1.bf16.msra.mxu0 %v442_v39  ;;  %485 = vmatprep.mubr.bf16.mxu0 %v1863_v14 }
  0x9e   : > { %v557_v41 = vpop.permute.xlu0 %556  ;;  %467 = vmatprep.subr.bf16.mxu0 %v441_v40 }
  0x9f   : > { %v559_v43 = vpop.permute.xlu1 %558  ;;  %1755 = vmatpush3.bf16.msra.mxu1 %v432_v37 }
  0xa0   : > { %1760 = vmatprep.subr.bf16.mxu1 %v2227_v0  ;;  %v564_v45 = vsel %vm560_vm4, %v557_v41, %v559_v43 }
  0xa1   : > { %468 = vmatpush1.bf16.msra.mxu0 %v440_v44  ;;  %v1850_v44 = vld [vmem:[%s2224_s1 + $0x38] sm:$0xff]  }
  0xa2   : > { %v555_v46 = vpop.permute.xlu0 %554  ;;  %586 = vmatprep.subr.bf16.mxu0 %v564_v45  ;;  %1757 = vmatmul.mubr.msk.bf16.vlgmr.msra.gmra.mxu1 %vm242_vm2, %v1845_v42 }
  0xa3   : > { %v563_v47 = vsel %vm560_vm4, %v555_v46, %v557_v41  ;;  %v551_v48 = vpop.permute.xlu1 %550  ;;  %1761 = vmatpush3.bf16.msra.mxu1 %v559_v43  ;;  %1764 = vmatprep.mubr.msk.bf16.mxu1 %vm1861_vm0, %v2227_v0 }
  0xa4   : > { %1673 = vmatmul.mubr.msk.bf16.vlgmr.msra.gmra.mxu0 %vm242_vm2, %v1845_v42  ;;  %1762 = vmatprep.subr.bf16.mxu1 %v2227_v0 }
  0xa5   : > { %587 = vmatpush1.bf16.msra.mxu0 %v563_v47  ;;  %606 = vmatprep.mubr.bf16.mxu0 %v1863_v14 }
  0xa6   : > { %v553_v49 = vpop.permute.xlu0 %552 }
  0xa7   : > { %v549_v51 = vpop.permute.xlu1 %548  ;;  %1763 = vmatpush3.bf16.msra.mxu1 %v553_v49  ;;  %v562_v52 = vsel %vm560_vm4, %v551_v48, %v553_v49 }
  0xa8   : > { %v561_v53 = vsel %vm560_vm4, %v549_v51, %v551_v48  ;;  %588 = vmatprep.subr.bf16.mxu0 %v562_v52  ;;  %1768 = vmatprep.subr.bf16.mxu1 %v2227_v0 }
  0xa9   : > { %589 = vmatpush1.bf16.msra.mxu0 %v561_v53 }
  0xaa   : > { %v678_v54 = vpop.permute.xlu0 %677  ;;  %1765 = vmatmul.mubr.msk.bf16.vlgmr.msra.gmra.mxu1 %vm242_vm2, %v1846_v50 }
  0xab   : > { %v680_v55 = vpop.permute.xlu1 %679  ;;  %1772 = vmatprep.mubr.msk.bf16.mxu1 %vm1861_vm0, %v2227_v0 }
  0xac   : > { %1676 = vmatmul.mubr.msk.bf16.vlgmr.msra.gmra.mxu0 %vm242_vm2, %v1846_v50  ;;  %v685_v56 = vsel %vm681_vm5, %v678_v54, %v680_v55  ;;  %1769 = vmatpush3.bf16.msra.mxu1 %v680_v55  ;;  %v1851_v55 = vld [vmem:[%s2224_s1 + $0x40] sm:$0xff]  }
  0xad   : > { %707 = vmatprep.subr.bf16.mxu0 %v685_v56  ;;  %1770 = vmatprep.subr.bf16.mxu1 %v2227_v0 }
  0xae   : > { %v676_v57 = vpop.permute.xlu0 %675  ;;  %727 = vmatprep.mubr.bf16.mxu0 %v1863_v14 }
  0xaf   : > { %v684_v58 = vsel %vm681_vm5, %v676_v57, %v678_v54  ;;  %v672_v59 = vpop.permute.xlu1 %671 }
  0xb0   : > { %708 = vmatpush1.bf16.msra.mxu0 %v684_v58 }
  0xb2   : > { %v674_v60 = vpop.permute.xlu0 %673 }
  0xb3   : > { %v670_v62 = vpop.permute.xlu1 %669  ;;  %1771 = vmatpush3.bf16.msra.mxu1 %v674_v60  ;;  %v683_v63 = vsel %vm681_vm5, %v672_v59, %v674_v60 }
  0xb4   : > { %v682_v4 = vsel %vm681_vm5, %v670_v62, %v672_v59  ;;  %709 = vmatprep.subr.bf16.mxu0 %v683_v63  ;;  %1776 = vmatprep.subr.bf16.mxu1 %v2227_v0 }
  0xb5   : > { %710 = vmatpush1.bf16.msra.mxu0 %v682_v4 }
  0xb6   : > { %v799_v8 = vpop.permute.xlu0 %798  ;;  %1773 = vmatmul.mubr.msk.bf16.vlgmr.msra.gmra.mxu1 %vm242_vm2, %v1847_v61 }
  0xb7   : > { %v801_v11 = vpop.permute.xlu1 %800  ;;  %1780 = vmatprep.mubr.msk.bf16.mxu1 %vm1861_vm0, %v2227_v0 }
  0xb8   : > { %1679 = vmatmul.mubr.msk.bf16.vlgmr.msra.gmra.mxu0 %vm242_vm2, %v1847_v61  ;;  %v806_v15 = vsel %vm802_vm6, %v799_v8, %v801_v11  ;;  %1777 = vmatpush3.bf16.msra.mxu1 %v801_v11 }
  0xb9   : > { %828 = vmatprep.subr.bf16.mxu0 %v806_v15  ;;  %1778 = vmatprep.subr.bf16.mxu1 %v2227_v0 }
  0xba   : > { %v797_v18 = vpop.permute.xlu0 %796  ;;  %848 = vmatprep.mubr.bf16.mxu0 %v1863_v14 }
  0xbb   : > { %v805_v19 = vsel %vm802_vm6, %v797_v18, %v799_v8  ;;  %v793_v20 = vpop.permute.xlu1 %792 }
  0xbc   : > { %829 = vmatpush1.bf16.msra.mxu0 %v805_v19 }
  0xbe   : > { %v795_v21 = vpop.permute.xlu0 %794 }
  0xbf   : > { %v791_v23 = vpop.permute.xlu1 %790  ;;  %1779 = vmatpush3.bf16.msra.mxu1 %v795_v21  ;;  %v804_v24 = vsel %vm802_vm6, %v793_v20, %v795_v21 }
  0xc0   : > { %v803_v25 = vsel %vm802_vm6, %v791_v23, %v793_v20  ;;  %830 = vmatprep.subr.bf16.mxu0 %v804_v24  ;;  %1784 = vmatprep.subr.bf16.mxu1 %v2227_v0 }
  0xc1   : > { %831 = vmatpush1.bf16.msra.mxu0 %v803_v25 }
  0xc2   : > { %v920_v26 = vpop.permute.xlu0 %919  ;;  %1781 = vmatmul.mubr.msk.bf16.vlgmr.msra.gmra.mxu1 %vm242_vm2, %v1848_v22 }
  0xc3   : > { %v922_v27 = vpop.permute.xlu1 %921  ;;  %1788 = vmatprep.mubr.msk.bf16.mxu1 %vm1861_vm0, %v2227_v0 }
  0xc4   : > { %1682 = vmatmul.mubr.msk.bf16.vlgmr.msra.gmra.mxu0 %vm242_vm2, %v1848_v22  ;;  %v927_v28 = vsel %vm923_vm7, %v920_v26, %v922_v27  ;;  %1785 = vmatpush3.bf16.msra.mxu1 %v922_v27 }
  0xc5   : > { %949 = vmatprep.subr.bf16.mxu0 %v927_v28  ;;  %1786 = vmatprep.subr.bf16.mxu1 %v2227_v0 }
  0xc6   : > { %v918_v29 = vpop.permute.xlu0 %917  ;;  %969 = vmatprep.mubr.bf16.mxu0 %v1863_v14 }
  0xc7   : > { %v926_v30 = vsel %vm923_vm7, %v918_v29, %v920_v26  ;;  %v914_v31 = vpop.permute.xlu1 %913 }
  0xc8   : > { %950 = vmatpush1.bf16.msra.mxu0 %v926_v30 }
  0xca   : > { %v916_v32 = vpop.permute.xlu0 %915 }
  0xcb   : > { %v912_v34 = vpop.permute.xlu1 %911  ;;  %1787 = vmatpush3.bf16.msra.mxu1 %v916_v32  ;;  %v925_v35 = vsel %vm923_vm7, %v914_v31, %v916_v32 }
  0xcc   : > { %v924_v36 = vsel %vm923_vm7, %v912_v34, %v914_v31  ;;  %951 = vmatprep.subr.bf16.mxu0 %v925_v35  ;;  %1792 = vmatprep.subr.bf16.mxu1 %v2227_v0 }
  0xcd   : > { %952 = vmatpush1.bf16.msra.mxu0 %v924_v36 }
  0xce   : > { %v1041_v37 = vpop.permute.xlu0 %1040  ;;  %1789 = vmatmul.mubr.msk.bf16.vlgmr.msra.gmra.mxu1 %vm242_vm2, %v1849_v33 }
  0xcf   : > { %v1043_v38 = vpop.permute.xlu1 %1042  ;;  %1796 = vmatprep.mubr.msk.bf16.mxu1 %vm1861_vm0, %v2227_v0 }
  0xd0   : > { %1685 = vmatmul.mubr.msk.bf16.vlgmr.msra.gmra.mxu0 %vm242_vm2, %v1849_v33  ;;  %v1048_v39 = vsel %vm1044_vm8, %v1041_v37, %v1043_v38  ;;  %1793 = vmatpush3.bf16.msra.mxu1 %v1043_v38 }
  0xd1   : > { %1070 = vmatprep.subr.bf16.mxu0 %v1048_v39  ;;  %1794 = vmatprep.subr.bf16.mxu1 %v2227_v0 }
  0xd2   : > { %v1039_v40 = vpop.permute.xlu0 %1038  ;;  %1090 = vmatprep.mubr.bf16.mxu0 %v1863_v14 }
  0xd3   : > { %v1047_v41 = vsel %vm1044_vm8, %v1039_v40, %v1041_v37  ;;  %v1035_v42 = vpop.permute.xlu1 %1034 }
  0xd4   : > { %1071 = vmatpush1.bf16.msra.mxu0 %v1047_v41 }
  0xd6   : > { %v1037_v43 = vpop.permute.xlu0 %1036 }
  0xd7   : > { %v1033_v45 = vpop.permute.xlu1 %1032  ;;  %1795 = vmatpush3.bf16.msra.mxu1 %v1037_v43  ;;  %v1046_v46 = vsel %vm1044_vm8, %v1035_v42, %v1037_v43 }
  0xd8   : > { %v1045_v47 = vsel %vm1044_vm8, %v1033_v45, %v1035_v42  ;;  %1072 = vmatprep.subr.bf16.mxu0 %v1046_v46  ;;  %1800 = vmatprep.subr.bf16.mxu1 %v2227_v0 }
  0xd9   : > { %1073 = vmatpush1.bf16.msra.mxu0 %v1045_v47 }
  0xda   : > { %v1162_v48 = vpop.permute.xlu0 %1161  ;;  %1797 = vmatmul.mubr.msk.bf16.vlgmr.msra.gmra.mxu1 %vm242_vm2, %v1850_v44 }
  0xdb   : > { %v1164_v49 = vpop.permute.xlu1 %1163  ;;  %1804 = vmatprep.mubr.msk.bf16.mxu1 %vm1861_vm0, %v2227_v0 }
  0xdc   : > { %1688 = vmatmul.mubr.msk.bf16.vlgmr.msra.gmra.mxu0 %vm242_vm2, %v1850_v44  ;;  %v1169_v50 = vsel %vm1165_vm9, %v1162_v48, %v1164_v49  ;;  %1801 = vmatpush3.bf16.msra.mxu1 %v1164_v49 }
  0xdd   : > { %1191 = vmatprep.subr.bf16.mxu0 %v1169_v50  ;;  %1802 = vmatprep.subr.bf16.mxu1 %v2227_v0 }
  0xde   : > { %v1160_v51 = vpop.permute.xlu0 %1159  ;;  %1211 = vmatprep.mubr.bf16.mxu0 %v1863_v14 }
  0xdf   : > { %v1168_v52 = vsel %vm1165_vm9, %v1160_v51, %v1162_v48  ;;  %v1156_v53 = vpop.permute.xlu1 %1155 }
  0xe0   : > { %1192 = vmatpush1.bf16.msra.mxu0 %v1168_v52 }
  0xe2   : > { %v1158_v54 = vpop.permute.xlu0 %1157 }
  0xe3   : > { %v1154_v56 = vpop.permute.xlu1 %1153  ;;  %1803 = vmatpush3.bf16.msra.mxu1 %v1158_v54  ;;  %v1167_v57 = vsel %vm1165_vm9, %v1156_v53, %v1158_v54 }
  0xe4   : > { %v1166_v58 = vsel %vm1165_vm9, %v1154_v56, %v1156_v53  ;;  %1193 = vmatprep.subr.bf16.mxu0 %v1167_v57 }
  0xe5   : > { %1194 = vmatpush1.bf16.msra.mxu0 %v1166_v58 }
  0xe6   : > { %1805 = vmatmul.mubr.msk.bf16.vlgmr.msra.gmra.mxu1 %vm242_vm2, %v1851_v55 }
  0xe7   : > { %1374 = vmatprep.mubr.f32.mxu1 %v2227_v0 }
  0xe8   : > { %1691 = vmatmul.mubr.msk.bf16.vlgmr.msra.gmra.mxu0 %vm242_vm2, %v1851_v55 }
  0xe9   : > { %1356 = vmatprep.mubr.f32.mxu0 %v2227_v0 }
 0x152   : > { %v323_v14 = vpop.f32.mrf.mxu1 }
 0x154   : > { %v2140_v59 = vpop.f32.mrf.mxu0  ;;  %v1742_v60 = vpop.f32.mrf.mxu1 }
 0x156   : > { %v2142_v61 = vpop.f32.mrf.mxu0  ;;  %v326_v62 = vpop.f32.mrf.mxu1 }
 0x158   : > { %v284_v63 = vpop.f32.mrf.mxu0  ;;  %v1743_v4 = vpop.f32.mrf.mxu1 }
 0x15a   : > { %v286_v8 = vpop.f32.mrf.mxu0  ;;  %v415_v11 = vpop.f32.mrf.mxu1 }
 0x15b   : > { %v416_v15 = vadd.f32 %v415_v11, %v323_v14 }
 0x15c   : > { %v372_v18 = vpop.f32.mrf.mxu0  ;;  %v1750_v19 = vpop.f32.mrf.mxu1 }
 0x15e   : > { %v374_v20 = vpop.f32.mrf.mxu0  ;;  %v418_v21 = vpop.f32.mrf.mxu1 }
 0x15f   : > { %v419_v22 = vadd.f32 %v418_v21, %v326_v62 }
 0x160   : > { %v376_v23 = vpop.f32.mrf.mxu0  ;;  %v1751_v24 = vpop.f32.mrf.mxu1 }
 0x162   : > { %v378_v25 = vpop.f32.mrf.mxu0  ;;  %v530_v26 = vpop.f32.mrf.mxu1 }
 0x163   : > { %v539_v27 = vadd.f32 %v530_v26, %v416_v15 }
 0x164   : > { %v487_v28 = vpop.f32.mrf.mxu0  ;;  %v1758_v29 = vpop.f32.mrf.mxu1 }
 0x166   : > { %v489_v30 = vpop.f32.mrf.mxu0  ;;  %v533_v31 = vpop.f32.mrf.mxu1 }
 0x167   : > { %v542_v32 = vadd.f32 %v533_v31, %v419_v22  ;;  %v373_v31 = vadd.f32 %v372_v18, %v2140_v59 }
 0x168   : > { %v491_v33 = vpop.f32.mrf.mxu0  ;;  %v1759_v34 = vpop.f32.mrf.mxu1 }
 0x169   : > { %v377_v34 = vadd.f32 %v376_v23, %v284_v63 }
 0x16a   : > { %v493_v35 = vpop.f32.mrf.mxu0  ;;  %v651_v36 = vpop.f32.mrf.mxu1 }
 0x16b   : > { %v2144_v37 = vadd.f32 %v651_v36, %v539_v27 }
 0x16c   : > { %v608_v38 = vpop.f32.mrf.mxu0  ;;  %v1766_v39 = vpop.f32.mrf.mxu1 }
 0x16e   : > { %v610_v40 = vpop.f32.mrf.mxu0  ;;  %v654_v41 = vpop.f32.mrf.mxu1 }
 0x16f   : > { %v663_v59 = vadd.f32 %v654_v41, %v542_v32 }
 0x170   : > { %v1767_v42 = vpop.f32.mrf.mxu1  ;;  %v612_v43 = vpop.f32.mrf.mxu0 }
 0x171   : > { %v375_v42 = vadd.f32 %v374_v20, %v2142_v61 }
 0x172   : > { %v614_v44 = vpop.f32.mrf.mxu0 }
 0x173   : > { %v538_v0 = vadd.f32 %v489_v30, %v375_v42 }
 0x175   : > { %v659_v2 = vadd.f32 %v610_v40, %v538_v0 }
 0x176   : > { %v772_v45 = vpop.f32.mrf.mxu1 }
 0x177   : > { %v781_v0 = vadd.f32 %v772_v45, %v2144_v37 }
 0x178   : > { %v729_v46 = vpop.f32.mrf.mxu0  ;;  %v1774_v47 = vpop.f32.mrf.mxu1 }
 0x179   : > { %v379_v47 = vadd.f32 %v378_v25, %v286_v8 }
 0x17a   : > { %v731_v48 = vpop.f32.mrf.mxu0  ;;  %v775_v49 = vpop.f32.mrf.mxu1 }
 0x17b   : > { %v541_v7 = vadd.f32 %v493_v35, %v379_v47  ;;  %v780_v63 = vadd.f32 %v731_v48, %v659_v2  ;;  %v784_v20 = vadd.f32 %v775_v49, %v663_v59 }
 0x17c   : > { %v1775_v50 = vpop.f32.mrf.mxu1  ;;  %v733_v51 = vpop.f32.mrf.mxu0 }
 0x17d   : > { %v662_v6 = vadd.f32 %v614_v44, %v541_v7 }
 0x17e   : > { %v735_v52 = vpop.f32.mrf.mxu0 }
 0x17f   : > { %v783_v18 = vadd.f32 %v735_v52, %v662_v6 }
 0x182   : > { %v893_v53 = vpop.f32.mrf.mxu1 }
 0x184   : > { %v850_v54 = vpop.f32.mrf.mxu0  ;;  %v1782_v55 = vpop.f32.mrf.mxu1 }
 0x185   : > { %v537_v55 = vadd.f32 %v487_v28, %v373_v31 }
 0x186   : > { %v852_v56 = vpop.f32.mrf.mxu0  ;;  %v896_v57 = vpop.f32.mrf.mxu1 }
 0x187   : > { %v658_v1 = vadd.f32 %v608_v38, %v537_v55  ;;  %v901_v25 = vadd.f32 %v852_v56, %v780_v63  ;;  %v905_v7 = vadd.f32 %v896_v57, %v784_v20 }
 0x188   : > { %v1783_v58 = vpop.f32.mrf.mxu1  ;;  %v854_v14 = vpop.f32.mrf.mxu0 }
 0x189   : > { %v540_v58 = vadd.f32 %v491_v33, %v377_v34  ;;  %v779_v23 = vadd.f32 %v729_v46, %v658_v1  ;;  %v902_v1 = vadd.f32 %v893_v53, %v781_v0 }
 0x18a   : > { %v856_v60 = vpop.f32.mrf.mxu0 }
 0x18b   : > { %v904_v28 = vadd.f32 %v856_v60, %v783_v18  ;;  %v900_v33 = vadd.f32 %v850_v54, %v779_v23 }
 0x18e   : > { %v1014_v62 = vpop.f32.mrf.mxu1 }
 0x18f   : > { %v1023_v52 = vadd.f32 %v1014_v62, %v902_v1 }
 0x190   : > { %v971_v4 = vpop.f32.mrf.mxu0  ;;  %v1790_v11 = vpop.f32.mrf.mxu1 }
 0x191   : > { %v1021_v44 = vadd.f32 %v971_v4, %v900_v33 }
 0x192   : > { %v973_v15 = vpop.f32.mrf.mxu0  ;;  %v1017_v19 = vpop.f32.mrf.mxu1 }
 0x193   : > { %v1022_v38 = vadd.f32 %v973_v15, %v901_v25 }
 0x194   : > { %v1791_v21 = vpop.f32.mrf.mxu1  ;;  %v975_v22 = vpop.f32.mrf.mxu0 }
 0x195   : > { %v661_v21 = vadd.f32 %v612_v43, %v540_v58 }
 0x196   : > { %v977_v24 = vpop.f32.mrf.mxu0 }
 0x197   : > { %v782_v3 = vadd.f32 %v733_v51, %v661_v21  ;;  %v1025_v40 = vadd.f32 %v977_v24, %v904_v28  ;;  %v1276_v24 = vld [vmem:[%s2225_s2 + $0x8] sm:$0xff] }
 0x199   : > { %v903_v10 = vadd.f32 %v854_v14, %v782_v3  ;;  %v1026_v3 = vadd.f32 %v1017_v19, %v905_v7  ;;  %v1278_v19 = vld [vmem:[%s2225_s2 + $0x18] sm:$0xff] }
 0x19a   : > { %v1135_v26 = vpop.f32.mrf.mxu1 }
 0x19b   : > { %v1024_v30 = vadd.f32 %v975_v22, %v903_v10  ;;  %v1144_v37 = vadd.f32 %v1135_v26, %v1023_v52  ;;  %v1275_v22 = vld [vmem:[%s2225_s2] sm:$0xff]  ;;  %v1277_v26 = vld [vmem:[%s2225_s2 + $0x10] sm:$0xff] }
 0x19c   : > { %v1092_v27 = vpop.f32.mrf.mxu0  ;;  %v1798_v29 = vpop.f32.mrf.mxu1 }
 0x19d   : > { %v1142_v48 = vadd.f32 %v1092_v27, %v1021_v44  ;;  %v2243_v27 = vmov 0.0   ;;  %v2246_v44 = vld [vmem:[#allocation4_spill] sm:$0xff] }
 0x19e   : > { %v1094_v36 = vpop.f32.mrf.mxu0  ;;  %v1138_v39 = vpop.f32.mrf.mxu1 }
 0x19f   : > { %v1143_v41 = vadd.f32 %v1094_v36, %v1022_v38  ;;  %v1147_v10 = vadd.f32 %v1138_v39, %v1026_v3  ;;  %v2245_v38 = vld [vmem:[#allocation8_spill] sm:$0xff] }
 0x1a0   : > { %v1799_v50 = vpop.f32.mrf.mxu1  ;;  %v1096_v11 = vpop.f32.mrf.mxu0 }
 0x1a1   : > { %v1145_v32 = vadd.f32 %v1096_v11, %v1024_v30 }
 0x1a2   : > { %v1098_v29 = vpop.f32.mrf.mxu0 }
 0x1a3   : > { %v1146_v46 = vadd.f32 %v1098_v29, %v1025_v40 }
 0x1a6   : > { %v1256_v13 = vpop.f32.mrf.mxu1 }
 0x1a7   : > { %v1265_v4 = vadd.f32 %v1256_v13, %v1144_v37 }
 0x1a8   : > { %v1213_v61 = vpop.f32.mrf.mxu0  ;;  %v1806_v8 = vpop.f32.mrf.mxu1 }
 0x1a9   : > { %v1263_v14 = vadd.f32 %v1213_v61, %v1142_v48  ;;  %v1271_v13 = vmax.f32 %v1265_v4, 0.0 }
 0x1aa   : > { %v1215_v35 = vpop.f32.mrf.mxu0  ;;  %v1259_v43 = vpop.f32.mrf.mxu1 }
 0x1ab   : > { %v1264_v54 = vadd.f32 %v1215_v35, %v1143_v41  ;;  %v1268_v45 = vadd.f32 %v1259_v43, %v1147_v10  ;;  %v1269_v53 = vmax.f32 %v1263_v14, 0.0  ;;  %v2244_v43 = vld [vmem:[#allocation7_spill] sm:$0xff]  ;;  %v2250_v14 = vld [vmem:[#allocation6_spill] sm:$0xff] }
 0x1ac   : > { %v1217_v2 = vpop.f32.mrf.mxu0  ;;  %v1807_v6 = vpop.f32.mrf.mxu1 }
 0x1ad   : > { %v1266_v49 = vadd.f32 %v1217_v2, %v1145_v32  ;;  %v1270_v15 = vmax.f32 %v1264_v54, 0.0  ;;  %v1274_v62 = vmax.f32 %v1268_v45, 0.0  ;;  %v2247_v6 = vld [vmem:[#allocation2_spill] sm:$0xff]  ;;  %v2249_v54 = vld [vmem:[#allocation3_spill] sm:$0xff] }
 0x1ae   : > { %v1219_v51 = vpop.f32.mrf.mxu0 }
 0x1af   : > { %v1267_v56 = vadd.f32 %v1219_v51, %v1146_v46  ;;  %v1272_v60 = vmax.f32 %v1266_v49, 0.0  ;;  %v2248_v46 = vld [vmem:[#allocation5_spill] sm:$0xff] }
 0x1b1   : > { %v1273_v57 = vmax.f32 %v1267_v56, 0.0 }
 0x1b3   : > { %1320 = vmatprep.subr.mxu0 %v1273_v57  ;;  %1818 = vmatprep.subr.mxu1 %v1273_v57 }
 0x1b4   : > { %1321 = vmatpush1.msra.mxu0 %v1272_v60  ;;  %1820 = vmatpush1.msra.mxu1 %v1272_v60 }
 0x1b5   : > { %1322 = vmatprep.subr.mxu0 %v1270_v15  ;;  %1819 = vmatprep.subr.mxu1 %v1270_v15 }
 0x1b6   : > { %1323 = vmatpush1.msra.mxu0 %v1269_v53  ;;  %1821 = vmatpush1.msra.mxu1 %v1269_v53 }
 0x1b7   : > { %1696 = vmatmul.mubr.msk.f32.vlgmr.msra.gmra.mxu1 %vm1279_vm10, %v1278_v19  ;;  %1808 = vmatprep.subr.mxu1 %v1274_v62 }
 0x1b8   : > { %1809 = vmatpush3.msra.mxu1 %v1274_v62  ;;  %1693 = vmatmul.mubr.msk.f32.vlgmr.msra.gmra.mxu0 %vm1279_vm10, %v1275_v22 }
 0x1b9   : > { %1810 = vmatprep.subr.mxu1 %v1271_v13  ;;  %1812 = vmatprep.mubr.msk.f32.mxu1 %vm1279_vm10, %v1275_v22 }
 0x1ba   : > { %1811 = vmatpush3.msra.mxu1 %v1271_v13  ;;  %1362 = vmatprep.mubr.f32.mxu0 %v2243_v27 }
 0x1bb   : > { %1813 = vmatmul.mubr.msk.f32.vlgmr.msra.gmra.mxu1 %vm1279_vm10, %v1276_v24 }
 0x1bc   : > { %1694 = vmatmul.mubr.msk.f32.gmra.mxu0 %vm1279_vm10, %v1276_v24  ;;  %1815 = vmatprep.mubr.msk.f32.mxu1 %vm1279_vm10, %v1277_v26 }
 0x1bd   : > { %1368 = vmatprep.mubr.f32.mxu0 %v2243_v27 }
 0x1bf   : > { %1816 = vmatmul.mubr.msk.f32.gmra.mxu1 %vm1279_vm10, %v1278_v19 }
 0x1c0   : > { %1695 = vmatmul.mubr.msk.f32.gmra.mxu0 %vm1279_vm10, %v1277_v26 }
 0x277   : > { %v1376_v31 = vpop.f32.mrf.mxu1 }
 0x278   : > { %1496 = vrot.lane.b32.xlu1 %v1376_v31, %s1871_s29  ;;  %v1358_v34 = vpop.f32.mrf.mxu0 }
 0x279   : > { %v1378_v36 = vpop.f32.mrf.mxu1  ;;  %1478 = vrot.lane.b32.xlu0 %v1358_v34, %s1871_s29 }
 0x27a   : > { %v1360_v39 = vpop.f32.mrf.mxu0 }
 0x27b   : > { %v1814_v42 = vpop.f32.mrf.mxu1 }
 0x27c   : > { %1480 = vrot.lane.b32.xlu1 %v1360_v39, %s1871_s29  ;;  %v1364_v50 = vpop.f32.mrf.mxu0 }
 0x27d   : > { %v1447_v47 = vpop.f32.mrf.mxu1 }
 0x27e   : > { %1482 = vrot.lane.b32.xlu0 %v1447_v47, %s1871_s29  ;;  %v1366_v55 = vpop.f32.mrf.mxu0 }
 0x27f   : > { %v1817_v11 = vpop.f32.mrf.mxu1 }
 0x280   : > { %1484 = vrot.lane.b32.xlu1 %v1364_v50, %s1871_s29  ;;  %v1370_v58 = vpop.f32.mrf.mxu0 }
 0x281   : > { %v1457_v29 = vpop.f32.mrf.mxu1 }
 0x282   : > { %1486 = vrot.lane.b32.xlu0 %v1366_v55, %s1871_s29  ;;  %v1372_v21 = vpop.f32.mrf.mxu0 }
 0x284   : > { %1488 = vrot.lane.b32.xlu1 %v1814_v42, %s1871_s29 }
 0x286   : > { %1490 = vrot.lane.b32.xlu0 %v1370_v58, %s1871_s29 }
 0x288   : > { %1492 = vrot.lane.b32.xlu1 %v1372_v21, %s1871_s29 }
 0x28a   : > { %1494 = vrot.lane.b32.xlu0 %v1457_v29, %s1871_s29 }
 0x28c   : > { %1500 = vrot.lane.b32.xlu1 %v1817_v11, %s1871_s29 }
 0x28e   : > { %1498 = vrot.lane.b32.xlu0 %v1378_v36, %s1871_s29 }
 0x2ea   : > { %v1497_v59 = vpop.permute.xlu1 %1496 }
 0x2eb   : > { %v1532_v63 = vadd.f32 %v1497_v59, %v1919_v5  ;;  %v1479_v18 = vpop.permute.xlu0 %1478 }
 0x2ec   : > { %v1523_v23 = vadd.f32 %v1479_v18, %v1950_v16 }
 0x2ed   : > { %1565 = vrot.lane.b32.xlu1 %v1532_v63, %s1866_s21 }
 0x2ee   : > { %v1481_v61 = vpop.permute.xlu1 %1480  ;;  %1547 = vrot.lane.b32.xlu0 %v1523_v23, %s1866_s21 }
 0x2ef   : > { %v1503_v8 = vsel %vm1502_vm11, %v1479_v18, %v1481_v61 }
 0x2f0   : > { %v1524_v20 = vadd.f32 %v1503_v8, %v1931_v9  ;;  %v1483_v25 = vpop.permute.xlu0 %1482 }
 0x2f1   : > { %v1504_v28 = vsel %vm1502_vm11, %v1481_v61, %v1483_v25 }
 0x2f2   : > { %v1525_v33 = vadd.f32 %v1504_v28, %v1940_v12  ;;  %v1485_v30 = vpop.permute.xlu1 %1484  ;;  %1549 = vrot.lane.b32.xlu1 %v1524_v20, %s1866_s21 }
 0x2f3   : > { %v1526_v5 = vadd.f32 %v1485_v30, %v1952_v17 }
 0x2f4   : > { %v1487_v16 = vpop.permute.xlu0 %1486  ;;  %1551 = vrot.lane.b32.xlu0 %v1525_v33, %s1866_s21 }
 0x2f5   : > { %v1505_v35 = vsel %vm1502_vm11, %v1485_v30, %v1487_v16 }
 0x2f6   : > { %v1527_v0 = vadd.f32 %v1505_v35, %v2244_v43  ;;  %v1489_v7 = vpop.permute.xlu1 %1488  ;;  %1553 = vrot.lane.b32.xlu1 %v1526_v5, %s1866_s21 }
 0x2f7   : > { %v1506_v9 = vsel %vm1502_vm11, %v1487_v16, %v1489_v7 }
 0x2f8   : > { %v1528_v40 = vadd.f32 %v1506_v9, %v2245_v38  ;;  %1555 = vrot.lane.b32.xlu0 %v1527_v0, %s1866_s21  ;;  %v1491_v12 = vpop.permute.xlu0 %1490 }
 0x2f9   : > { %v1529_v32 = vadd.f32 %v1491_v12, %v2246_v44 }
 0x2fa   : > { %1557 = vrot.lane.b32.xlu1 %v1528_v40, %s1866_s21  ;;  %v1493_v17 = vpop.permute.xlu1 %1492 }
 0x2fb   : > { %v1507_v2 = vsel %vm1502_vm11, %v1491_v12, %v1493_v17 }
 0x2fc   : > { %v1530_v1 = vadd.f32 %v1507_v2, %v2247_v6  ;;  %1559 = vrot.lane.b32.xlu0 %v1529_v32, %s1866_s21  ;;  %v1495_v3 = vpop.permute.xlu0 %1494 }
 0x2fd   : > { %v1508_v41 = vsel %vm1502_vm11, %v1493_v17, %v1495_v3 }
 0x2fe   : > { %v1531_v48 = vadd.f32 %v1508_v41, %v2248_v46  ;;  %1561 = vrot.lane.b32.xlu1 %v1530_v1, %s1866_s21  ;;  %v1501_v49 = vpop.permute.xlu1 %1500 }
 0x300   : > { %v1499_v51 = vpop.permute.xlu0 %1498  ;;  %1563 = vrot.lane.b32.xlu0 %v1531_v48, %s1866_s21 }
 0x301   : > { %v1509_v52 = vsel %vm1502_vm11, %v1497_v59, %v1499_v51  ;;  %v1510_v10 = vsel %vm1502_vm11, %v1499_v51, %v1501_v49 }
 0x302   : > { %v1533_v56 = vadd.f32 %v1509_v52, %v2249_v54  ;;  %v1534_v37 = vadd.f32 %v1510_v10, %v2250_v14 }
 0x304   : > { %1567 = vrot.lane.b32.xlu0 %v1533_v56, %s1866_s21  ;;  %1569 = vrot.lane.b32.xlu1 %v1534_v37, %s1866_s21 }
 0x35f   : > { %v1566_v45 = vpop.permute.xlu1 %1565 }
 0x360   : > { %v1548_v57 = vpop.permute.xlu0 %1547 }
 0x364   : > { %v1550_v60 = vpop.permute.xlu1 %1549 }
 0x365   : > { %v1572_v4 = vsel %vm681_vm5, %v1548_v57, %v1550_v60 }
 0x366   : > { %1592 = vst [vmem:[%s170_s5] sm:$0xff] %v1572_v4  ;;  %v1552_v15 = vpop.permute.xlu0 %1551 }
 0x367   : > { %v1573_v53 = vsel %vm681_vm5, %v1550_v60, %v1552_v15  ;;  %1594 = vst.msk [vmem:[%s170_s5 + $0x10] sm:$0xff] %vm242_vm2, %v1552_v15 }
 0x368   : > { %1593 = vst [vmem:[%s170_s5 + $0x8] sm:$0xff] %v1573_v53  ;;  %v1554_v19 = vpop.permute.xlu1 %1553 }
 0x36a   : > { %v1556_v62 = vpop.permute.xlu0 %1555 }
 0x36b   : > { %v1574_v22 = vsel %vm681_vm5, %v1554_v19, %v1556_v62 }
 0x36c   : > { %1595 = vst [vmem:[%s170_s5 + $0x18] sm:$0xff] %v1574_v22  ;;  %v1558_v13 = vpop.permute.xlu1 %1557 }
 0x36d   : > { %v1575_v24 = vsel %vm681_vm5, %v1556_v62, %v1558_v13  ;;  %1597 = vst.msk [vmem:[%s170_s5 + $0x28] sm:$0xff] %vm242_vm2, %v1558_v13 }
 0x36e   : > { %1596 = vst [vmem:[%s170_s5 + $0x20] sm:$0xff] %v1575_v24  ;;  %v1560_v26 = vpop.permute.xlu0 %1559 }
 0x370   : > { %v1562_v27 = vpop.permute.xlu1 %1561 }
 0x371   : > { %v1576_v31 = vsel %vm681_vm5, %v1560_v26, %v1562_v27 }
 0x372   : > { %v1564_v34 = vpop.permute.xlu0 %1563  ;;  %1598 = vst [vmem:[%s170_s5 + $0x30] sm:$0xff] %v1576_v31 }
 0x373   : > { %1600 = vst.msk [vmem:[%s170_s5 + $0x40] sm:$0xff] %vm242_vm2, %v1564_v34  ;;  %v1577_v36 = vsel %vm681_vm5, %v1562_v27, %v1564_v34 }
 0x374   : > { %1599 = vst [vmem:[%s170_s5 + $0x38] sm:$0xff] %v1577_v36 }
 0x376   : > { %v1568_v39 = vpop.permute.xlu0 %1567  ;;  %v1570_v42 = vpop.permute.xlu1 %1569 }
 0x377   : > { %v1578_v47 = vsel %vm681_vm5, %v1566_v45, %v1568_v39  ;;  %v1579_v50 = vsel %vm681_vm5, %v1568_v39, %v1570_v42  ;;  %1603 = vst.msk [vmem:[%s170_s5 + $0x58] sm:$0xff] %vm242_vm2, %v1570_v42 }
 0x378   : > { %1601 = vst [vmem:[%s170_s5 + $0x48] sm:$0xff] %v1578_v47  ;;  %1602 = vst [vmem:[%s170_s5 + $0x50] sm:$0xff] %v1579_v50 }
 0x379 PF: > { %s13_s12 = sadd.s32 1, %s1858_s12  }
 0x37a   : > { %p10_p4 = scmp.ge.s32.totalorder %s13_s12, 4  }
 0x37c   :  { %12 = sbr.rel (!%p10_p4) target bundleno = 1 (0x1), region = 62 }

</bundles_post_ra>
